<compile_context>
chip_gen: v7x
topology: tpu7x:2x2x1
jax: 0.10.0
libtpu: 0.0.40
codegen_flags: <defaults>
</compile_context>

<pallas_src>
import math

import jax
import jax.numpy as jnp
from jax import lax
from jax.experimental import pallas as pl
from jax.experimental.pallas import tpu as pltpu

_BIG_NEG = float(jnp.finfo(jnp.float32).min)
_F32 = 4  # bytes


# --------------------------------------------------------------------------- #
# Generation-aware VMEM sizing
# --------------------------------------------------------------------------- #
def _vmem_capacity_bytes():
    """Physical per-TensorCore VMEM; conservative 64 MiB fallback (v7x)."""
    try:
        info = pltpu.get_tpu_info()
        cap = getattr(info, "vmem_capacity_bytes", None)
        if cap:
            return int(cap)
    except Exception:
        pass
    return 64 * 1024 * 1024


def _vmem_budget_and_limit():
    cap = _vmem_capacity_bytes()
    # ~40% of physical as the tile-selection budget, ~75% as the scoped limit.
    # 128 MiB parts (v5e/v6e) -> ~51 MiB budget / 96 MiB limit;
    #  64 MiB parts (v7x)     -> ~25 MiB budget / 48 MiB limit.
    return int(cap * 0.40), int(cap * 0.75)


# --------------------------------------------------------------------------- #
# Projection kernel:  Q = q @ (Wq/sqrt(d_key)),  K = k @ Wk,  V = v @ Wv
# --------------------------------------------------------------------------- #
def _proj_kernel(wq_ref, wk_ref, wv_ref, q_ref, k_ref, v_ref,
                 Q_ref, K_ref, V_ref):
    Q_ref[...] = jnp.dot(q_ref[...], wq_ref[...], preferred_element_type=jnp.float32)
    K_ref[...] = jnp.dot(k_ref[...], wk_ref[...], preferred_element_type=jnp.float32)
    V_ref[...] = jnp.dot(v_ref[...], wv_ref[...], preferred_element_type=jnp.float32)


def _select_row_tile(n_rows, d_model, dkp, budget_bytes):
    cands = [d for d in range(n_rows, 0, -1) if n_rows % d == 0 and (d % 8 == 0 or d == n_rows)]
    for tr in cands:
        live = 2 * (3 * d_model * dkp + 3 * tr * d_model + 3 * tr * dkp) * _F32
        if live <= budget_bytes:
            return tr
    return cands[-1]


def _project(q2d, k2d, v2d, wq_p, wk_p, wv_p, *, budget, limit):
    R, d_model = q2d.shape
    dkp = wq_p.shape[1]
    tr = _select_row_tile(R, d_model, dkp, budget)
    n_r = R // tr

    w_spec = pl.BlockSpec((d_model, dkp), lambda r: (0, 0))
    x_spec = pl.BlockSpec((tr, d_model), lambda r: (r, 0))
    o_spec = pl.BlockSpec((tr, dkp), lambda r: (r, 0))

    out_shape = tuple(jax.ShapeDtypeStruct((R, dkp), jnp.float32) for _ in range(3))
    grid_spec = pltpu.PrefetchScalarGridSpec(
        num_scalar_prefetch=0,
        grid=(n_r,),
        in_specs=[w_spec, w_spec, w_spec, x_spec, x_spec, x_spec],
        out_specs=[o_spec, o_spec, o_spec],
    )
    return pl.pallas_call(
        _proj_kernel,
        out_shape=out_shape,
        grid_spec=grid_spec,
        compiler_params=pltpu.CompilerParams(
            dimension_semantics=("parallel",),
            vmem_limit_bytes=limit,
        ),
    )(wq_p, wk_p, wv_p, q2d, k2d, v2d)


# --------------------------------------------------------------------------- #
# Attention kernel: operates on pre-projected Q (scaled), K, V
# --------------------------------------------------------------------------- #
def _make_attn_kernel(*, has_mask, causal):
    def kernel(*refs):
        if has_mask:
            mask_ref, q_ref, k_ref, v_ref, out_ref, attn_ref = refs
        else:
            q_ref, k_ref, v_ref, out_ref, attn_ref = refs
            mask_ref = None

        Q = q_ref[...]          # (BT, TQ, DKP)  already scaled by 1/sqrt(d_key)
        K = k_ref[...]          # (BT, S,  DKP)
        V = v_ref[...]          # (BT, S,  DKP)
        tq = Q.shape[1]
        S = K.shape[1]

        # Scores: contract d_key of Q and K directly (no K transpose / XLU hop).
        scores = lax.dot_general(Q, K, (((2,), (2,)), ((0,), (0,))),
                                 preferred_element_type=jnp.float32)   # (BT,TQ,S)

        if causal:
            qi = pl.program_id(1)
            # 2-D iotas, broadcast over the batch tile (review: no (BT,TQ,S) iotas).
            row = lax.broadcasted_iota(jnp.int32, (tq, S), 0) + qi * tq
            col = lax.broadcasted_iota(jnp.int32, (tq, S), 1)
            scores = jnp.where((row >= col)[None, :, :], scores, _BIG_NEG)
        elif mask_ref is not None:
            m = mask_ref[...]                          # (TQ, S) int32
            scores = jnp.where(m[None, :, :] == 0, _BIG_NEG, scores)

        # Numerically stable softmax; reciprocal goes to the EUP (approximate).
        mmax = jnp.max(scores, axis=-1, keepdims=True)
        e = jnp.exp(scores - mmax)
        denom = jnp.sum(e, axis=-1, keepdims=True)
        attn = e * pl.reciprocal(denom, approx=True)

        attn_ref[...] = attn
        out_ref[...] = lax.dot_general(attn, V, (((2,), (1,)), ((0,), (0,))),
                                       preferred_element_type=jnp.float32)

    return kernel


def _divisors_desc(n):
    return [d for d in range(n, 0, -1) if n % d == 0]


def _tq_candidates(S):
    divs = _divisors_desc(S)
    c256 = [d for d in divs if d % 256 == 0]
    c128 = [d for d in divs if d % 128 == 0 and d % 256 != 0]
    c8 = [d for d in divs if d % 8 == 0 and d % 128 != 0]
    cands = c256 + c128 + c8
    if S not in cands:
        cands.append(S)       # full-extent fallback (allowed by the (8,128) rule)
    return cands


def _attn_live_bytes(bt, tq, S, dkp, has_mask):
    ins = bt * tq * dkp + 2 * bt * S * dkp                 # Q tile, K, V (f32 words)
    if has_mask:
        ins += tq * S                                      # int32 mask words
    outs = bt * tq * dkp + bt * tq * S                     # result, attn
    pipelined = 2 * (ins + outs) * _F32                    # double-buffered blocks
    interm = 2 * bt * tq * S * _F32                        # scores + exp
    return pipelined + interm


def _select_attn_tiles(B, S, dkp, has_mask, budget_bytes):
    tqs = _tq_candidates(S)
    chosen = None
    for bt in _divisors_desc(B):
        for tq in tqs:
            if _attn_live_bytes(bt, tq, S, dkp, has_mask) <= budget_bytes:
                chosen = (bt, tq)
                break
        if chosen:
            break
    if chosen is None:
        raise ValueError(
            "attention_head: no (batch, query) tiling fits the VMEM budget "
            f"({budget_bytes} bytes) for B={B}, S={S}, dkp={dkp}; a streamed "
            "key-axis (online-softmax) kernel is required for this size.")
    bt, tq = chosen
    # v7x dual-TensorCore bias: avoid collapsing the whole problem into one grid
    # step when the batch can be split (keeps both cores busy; harmless elsewhere).
    if bt == B and tq == S and B > 1:
        bt = next(d for d in range(B - 1, 0, -1) if B % d == 0)
    return bt, tq


# --------------------------------------------------------------------------- #
# Public wrapper
# --------------------------------------------------------------------------- #
def attention_head(queries, keys, values, wq, wk, wv, mask=None, *,
                   causal=False, block_b=None, block_q=None):
    """Pallas TPU implementation of AttentionHead.forward(..., save_activations=True).

    queries/keys/values: (B, S, d_model) float32
    wq/wk/wv:            (d_model, d_key) float32 (pre-transposed vs nn.Linear.weight)
    mask:                optional (S, S); positions where mask == 0 get a large
                         negative score (reference uses -inf; fully-masked rows here
                         give a uniform distribution instead of NaN).
    causal:              generate a causal mask in-kernel (mask must be None).
    Returns (result, attn, projected_values) with shapes
            (B, S, d_key), (B, S, S), (B, S, d_key).
    """
    if causal and mask is not None:
        raise ValueError("pass either causal=True or an explicit mask, not both")

    queries = queries.astype(jnp.float32)
    keys = keys.astype(jnp.float32)
    values = values.astype(jnp.float32)
    wq = wq.astype(jnp.float32)
    wk = wk.astype(jnp.float32)
    wv = wv.astype(jnp.float32)

    B, S, d_model = queries.shape
    d_key = wq.shape[1]
    budget, limit = _vmem_budget_and_limit()

    # Pad d_key to a lane-dense width; fold the 1/sqrt(d_key) scale into Wq here.
    dkp = max(128, ((d_key + 127) // 128) * 128)
    pad = dkp - d_key
    scale = 1.0 / math.sqrt(d_key)
    wq_p = jnp.pad(wq * scale, ((0, 0), (0, pad))) if pad else wq * scale
    wk_p = jnp.pad(wk, ((0, 0), (0, pad))) if pad else wk
    wv_p = jnp.pad(wv, ((0, 0), (0, pad))) if pad else wv

    # -------- Stage 1: projections (one pass, lane-padded outputs) -------- #
    R = B * S
    Q2, K2, V2 = _project(queries.reshape(R, d_model),
                          keys.reshape(R, d_model),
                          values.reshape(R, d_model),
                          wq_p, wk_p, wv_p, budget=budget, limit=limit)
    Q = Q2.reshape(B, S, dkp)
    K = K2.reshape(B, S, dkp)
    V = V2.reshape(B, S, dkp)

    # -------- Stage 2: attention over pre-projected tensors --------------- #
    has_mask = (mask is not None) and not causal
    bt, tq = _select_attn_tiles(B, S, dkp, has_mask, budget)
    if block_b is not None:
        bt = block_b
    if block_q is not None:
        tq = block_q
    assert B % bt == 0 and S % tq == 0
    grid = (B // bt, S // tq)

    kernel = _make_attn_kernel(has_mask=has_mask, causal=causal)

    in_specs = []
    operands = []
    if has_mask:
        mask_i32 = (mask != 0).astype(jnp.int32)           # int32: no sublane-packing hazard
        in_specs.append(pl.BlockSpec((tq, S), lambda b, qi: (qi, 0)))
        operands.append(mask_i32)
    in_specs += [
        pl.BlockSpec((bt, tq, dkp), lambda b, qi: (b, qi, 0)),   # Q (query tile)
        pl.BlockSpec((bt, S, dkp), lambda b, qi: (b, 0, 0)),     # K (full seq)
        pl.BlockSpec((bt, S, dkp), lambda b, qi: (b, 0, 0)),     # V (full seq)
    ]
    operands += [Q, K, V]

    out_shapes = (
        jax.ShapeDtypeStruct((B, S, dkp), jnp.float32),   # result (padded lanes)
        jax.ShapeDtypeStruct((B, S, S), jnp.float32),     # attn
    )
    out_specs = [
        pl.BlockSpec((bt, tq, dkp), lambda b, qi: (b, qi, 0)),
        pl.BlockSpec((bt, tq, S), lambda b, qi: (b, qi, 0)),
    ]

    grid_spec = pltpu.PrefetchScalarGridSpec(
        num_scalar_prefetch=0,
        grid=grid,
        in_specs=in_specs,
        out_specs=out_specs,
    )

    result_p, attn = pl.pallas_call(
        kernel,
        out_shape=out_shapes,
        grid_spec=grid_spec,
        compiler_params=pltpu.CompilerParams(
            dimension_semantics=("parallel", "parallel"),
            vmem_limit_bytes=limit,
        ),
    )(*operands)

    # Third output (leaf values) is a passthrough of the projected V.
    return result_p[..., :d_key], attn, V[..., :d_key]


# --------------------------------------------------------------------------- #
# Reference + self-test
# --------------------------------------------------------------------------- #
def _reference(queries, keys, values, wq, wk, wv, mask, d_key):
    Q = queries @ wq
    K = keys @ wk
    V = values @ wv
    attn = jnp.einsum("bqd,bkd->bqk", Q, K) / math.sqrt(d_key)
    if mask is not None:
        attn = jnp.where(mask == 0, -jnp.inf, attn)
    attn = jax.nn.softmax(attn, axis=-1)
    return attn @ V, attn, V


if __name__ == "__main__":
    B, S, d_model, d_key = 2, 8, 32, 16

    key = jax.random.PRNGKey(0)
    kq, kk, kv, kwq, kwk, kwv = jax.random.split(key, 6)

    queries = jax.random.normal(kq, (B, S, d_model), dtype=jnp.float32)
    keys_in = jax.random.normal(kk, (B, S, d_model), dtype=jnp.float32)
    values_in = jax.random.normal(kv, (B, S, d_model), dtype=jnp.float32)

    # Deterministic params (shapes from nn.Linear(d_model, d_key, bias=False)),
    # stored pre-transposed as (d_model, d_key).
    bound = 1.0 / math.sqrt(d_model)
    wq = jax.random.uniform(kwq, (d_model, d_key), jnp.float32, -bound, bound)
    wk = jax.random.uniform(kwk, (d_model, d_key), jnp.float32, -bound, bound)
    wv = jax.random.uniform(kwv, (d_model, d_key), jnp.float32, -bound, bound)

    # Causal mask (1 = keep, 0 = mask out), same for every batch element.
    mask = jnp.tril(jnp.ones((S, S), dtype=jnp.float32))

    r_ref, a_ref, v_ref = _reference(queries, keys_in, values_in, wq, wk, wv, mask, d_key)

    # Path 1: explicit mask (matches the PyTorch module call signature).
    result, attn, leaf_values = attention_head(
        queries, keys_in, values_in, wq, wk, wv, mask=mask)
    jax.block_until_ready((result, attn, leaf_values))
    assert jnp.allclose(result, r_ref, atol=1e-2, rtol=1e-2)
    assert jnp.allclose(attn, a_ref, atol=1e-2, rtol=1e-2)
    assert jnp.allclose(leaf_values, v_ref, atol=1e-5, rtol=1e-5)

    # Path 2: in-kernel causal mask (no (S,S) mask array read from HBM at all).
    result_c, attn_c, leaf_values_c = attention_head(
        queries, keys_in, values_in, wq, wk, wv, causal=True)
    jax.block_until_ready((result_c, attn_c, leaf_values_c))
    assert jnp.allclose(result_c, r_ref, atol=1e-2, rtol=1e-2)
    assert jnp.allclose(attn_c, a_ref, atol=1e-2, rtol=1e-2)
    assert jnp.allclose(leaf_values_c, v_ref, atol=1e-5, rtol=1e-5)

    print("KERNEL_OK")
</pallas_src>

<mosaic_0001>
module attributes {stable_mosaic.version = 11 : i64} {
  func.func @_proj_kernel(%arg0: i32, %arg1: memref<32x128xf32, #tpu.memory_space<vmem>>, %arg2: memref<32x128xf32, #tpu.memory_space<vmem>>, %arg3: memref<32x128xf32, #tpu.memory_space<vmem>>, %arg4: memref<16x32xf32, #tpu.memory_space<vmem>>, %arg5: memref<16x32xf32, #tpu.memory_space<vmem>>, %arg6: memref<16x32xf32, #tpu.memory_space<vmem>>, %arg7: memref<16x128xf32, #tpu.memory_space<vmem>>, %arg8: memref<16x128xf32, #tpu.memory_space<vmem>>, %arg9: memref<16x128xf32, #tpu.memory_space<vmem>>) attributes {dimension_semantics = [#tpu.dimension_semantics<parallel>], iteration_bounds = array<i64: 1>, scalar_prefetch = 0 : i64, scratch_operands = 0 : i64, tpu.core_type = #tpu.core_type<tc>, window_params = [{pipeline_mode = #tpu.pipeline_mode<synchronous>, transform_indices = @transform_0, window_bounds = array<i64: 32, 128>}, {pipeline_mode = #tpu.pipeline_mode<synchronous>, transform_indices = @transform_1, window_bounds = array<i64: 32, 128>}, {pipeline_mode = #tpu.pipeline_mode<synchronous>, transform_indices = @transform_2, window_bounds = array<i64: 32, 128>}, {transform_indices = @transform_3, window_bounds = array<i64: 16, 32>}, {transform_indices = @transform_4, window_bounds = array<i64: 16, 32>}, {transform_indices = @transform_5, window_bounds = array<i64: 16, 32>}, {transform_indices = @transform_6, window_bounds = array<i64: 16, 128>}, {transform_indices = @transform_7, window_bounds = array<i64: 16, 128>}, {transform_indices = @transform_8, window_bounds = array<i64: 16, 128>}]} {
    %c0 = arith.constant 0 : index
    %c0_0 = arith.constant 0 : index
    %0 = vector.load %arg4[%c0, %c0_0] : memref<16x32xf32, #tpu.memory_space<vmem>>, vector<16x32xf32>
    %c0_1 = arith.constant 0 : index
    %c0_2 = arith.constant 0 : index
    %1 = vector.load %arg1[%c0_1, %c0_2] : memref<32x128xf32, #tpu.memory_space<vmem>>, vector<32x128xf32>
    %cst = arith.constant dense<0.000000e+00> : vector<16x128xf32>
    %2 = tpu.matmul %0, %1, %cst {dimension_numbers = #tpu.dot_dimension_numbers<[1], [0], [0], [1], [0, 0, 1, 1], [], []>} : vector<16x32xf32>, vector<32x128xf32>, vector<16x128xf32> -> vector<16x128xf32>
    %c0_3 = arith.constant 0 : index
    %c0_4 = arith.constant 0 : index
    %3 = vector.load %arg7[%c0_3, %c0_4] : memref<16x128xf32, #tpu.memory_space<vmem>>, vector<16x128xf32>
    tpu.vector_store %arg7[%c0_3, %c0_4], %2 {strides = array<i32>} : memref<16x128xf32, #tpu.memory_space<vmem>>, vector<16x128xf32>,
    %c0_5 = arith.constant 0 : index
    %c0_6 = arith.constant 0 : index
    %4 = vector.load %arg5[%c0_5, %c0_6] : memref<16x32xf32, #tpu.memory_space<vmem>>, vector<16x32xf32>
    %c0_7 = arith.constant 0 : index
    %c0_8 = arith.constant 0 : index
    %5 = vector.load %arg2[%c0_7, %c0_8] : memref<32x128xf32, #tpu.memory_space<vmem>>, vector<32x128xf32>
    %cst_9 = arith.constant dense<0.000000e+00> : vector<16x128xf32>
    %6 = tpu.matmul %4, %5, %cst_9 {dimension_numbers = #tpu.dot_dimension_numbers<[1], [0], [0], [1], [0, 0, 1, 1], [], []>} : vector<16x32xf32>, vector<32x128xf32>, vector<16x128xf32> -> vector<16x128xf32>
    %c0_10 = arith.constant 0 : index
    %c0_11 = arith.constant 0 : index
    %7 = vector.load %arg8[%c0_10, %c0_11] : memref<16x128xf32, #tpu.memory_space<vmem>>, vector<16x128xf32>
    tpu.vector_store %arg8[%c0_10, %c0_11], %6 {strides = array<i32>} : memref<16x128xf32, #tpu.memory_space<vmem>>, vector<16x128xf32>,
    %c0_12 = arith.constant 0 : index
    %c0_13 = arith.constant 0 : index
    %8 = vector.load %arg6[%c0_12, %c0_13] : memref<16x32xf32, #tpu.memory_space<vmem>>, vector<16x32xf32>
    %c0_14 = arith.constant 0 : index
    %c0_15 = arith.constant 0 : index
    %9 = vector.load %arg3[%c0_14, %c0_15] : memref<32x128xf32, #tpu.memory_space<vmem>>, vector<32x128xf32>
    %cst_16 = arith.constant dense<0.000000e+00> : vector<16x128xf32>
    %10 = tpu.matmul %8, %9, %cst_16 {dimension_numbers = #tpu.dot_dimension_numbers<[1], [0], [0], [1], [0, 0, 1, 1], [], []>} : vector<16x32xf32>, vector<32x128xf32>, vector<16x128xf32> -> vector<16x128xf32>
    %c0_17 = arith.constant 0 : index
    %c0_18 = arith.constant 0 : index
    %11 = vector.load %arg9[%c0_17, %c0_18] : memref<16x128xf32, #tpu.memory_space<vmem>>, vector<16x128xf32>
    tpu.vector_store %arg9[%c0_17, %c0_18], %10 {strides = array<i32>} : memref<16x128xf32, #tpu.memory_space<vmem>>, vector<16x128xf32>,
    return
  }
  func.func @transform_0(%arg0: i32) -> (i32, i32) {
    %c0_i32 = arith.constant 0 : i32
    %c0_i32_0 = arith.constant 0 : i32
    %c0_i32_1 = arith.constant 0 : i32
    return %c0_i32, %c0_i32_0 : i32, i32
  }
  func.func @transform_1(%arg0: i32) -> (i32, i32) {
    %c0_i32 = arith.constant 0 : i32
    %c0_i32_0 = arith.constant 0 : i32
    %c0_i32_1 = arith.constant 0 : i32
    return %c0_i32, %c0_i32_0 : i32, i32
  }
  func.func @transform_2(%arg0: i32) -> (i32, i32) {
    %c0_i32 = arith.constant 0 : i32
    %c0_i32_0 = arith.constant 0 : i32
    %c0_i32_1 = arith.constant 0 : i32
    return %c0_i32, %c0_i32_0 : i32, i32
  }
  func.func @transform_3(%arg0: i32) -> (i32, i32) {
    %c0_i32 = arith.constant 0 : i32
    %c0_i32_0 = arith.constant 0 : i32
    return %arg0, %c0_i32 : i32, i32
  }
  func.func @transform_4(%arg0: i32) -> (i32, i32) {
    %c0_i32 = arith.constant 0 : i32
    %c0_i32_0 = arith.constant 0 : i32
    return %arg0, %c0_i32 : i32, i32
  }
  func.func @transform_5(%arg0: i32) -> (i32, i32) {
    %c0_i32 = arith.constant 0 : i32
    %c0_i32_0 = arith.constant 0 : i32
    return %arg0, %c0_i32 : i32, i32
  }
  func.func @transform_6(%arg0: i32) -> (i32, i32) {
    %c0_i32 = arith.constant 0 : i32
    %c0_i32_0 = arith.constant 0 : i32
    return %arg0, %c0_i32 : i32, i32
  }
  func.func @transform_7(%arg0: i32) -> (i32, i32) {
    %c0_i32 = arith.constant 0 : i32
    %c0_i32_0 = arith.constant 0 : i32
    return %arg0, %c0_i32 : i32, i32
  }
  func.func @transform_8(%arg0: i32) -> (i32, i32) {
    %c0_i32 = arith.constant 0 : i32
    %c0_i32_0 = arith.constant 0 : i32
    return %arg0, %c0_i32 : i32, i32
  }
}

</mosaic_0001>

<bundles_post_ra>
// kernel: tpu_custom_call.1
= control target key start
LH: loop header
LB: loop body
LE: loop exit
PB: predicated region body
PF: predicated region fallthrough
CT: control target
= control target key end

     0   :  { %14 = vsyncpa [#allocation3], 0  ;;  %s899_s0 = inlined_call_operand.hbm [shape: f32[32,128], index: 0, kind: input, shape index: {}]   ;;  %s900_s1 = inlined_call_operand.hbm [shape: f32[32,128], index: 1, kind: input, shape index: {}]   ;;  %s901_s2 = inlined_call_operand.hbm [shape: f32[32,128], index: 2, kind: input, shape index: {}]   ;;  %s902_s3 = inlined_call_operand.hbm [shape: f32[16,32], index: 3, kind: input, shape index: {}]   ;;  %s903_s4 = inlined_call_operand.hbm [shape: f32[16,32], index: 4, kind: input, shape index: {}]   ;;  %s904_s5 = inlined_call_operand.vmem [shape: f32[16,32], index: 5, kind: input, shape index: {}]   ;;  %s905_s6 = inlined_call_operand.hbm [shape: f32[16,128], index: 6, kind: output, shape index: {0}]   ;;  %s906_s7 = inlined_call_operand.hbm [shape: f32[16,128], index: 7, kind: output, shape index: {1}]   ;;  %s907_s8 = inlined_call_operand.hbm [shape: f32[16,128], index: 8, kind: output, shape index: {2}]  }
   0x1   :  { %15 = vsyncpa [#allocation6], 0 }
   0x2   :  { %16 = vsyncpa [#allocation9], 0 }
   0x3   :  { %17 = vsyncpa [#allocation4], 0 }
   0x4   :  { %18 = vsyncpa [#allocation13], 0  ;;  %s691_s27 = smov [#allocation5]   ;;  %s692_s29 = smov [#allocation8]  }
   0x5   :  { %s36_s28 = sshll.u32 %s691_s27, 4  ;;  %s60_s30 = sshll.u32 %s692_s29, 4  ;;  %s37_s28 = int_to_ptr.vmem [resolvable:$true] %s36_s28  ;;  %s746_s30 = int_to_ptr.vmem [resolvable:$true] %s60_s30 }
   0x6   :  { %s505_s11 = scalar_lea.hbm %s900_s1, 512 }
   0x7   :  { %p506_p0 = scmp.ne.s32.totalorder %s900_s1, %s505_s11  ;;  %p509_p1 = scmp.lt.u32.totalorder %s505_s11, %s900_s1 }
   0x9   :  { %p511_p2 = pnand %p509_p1, %p506_p0 }
   0xb   :  { %514 = shalt.err (!%p511_p2)
}
   0xc   :  { %s515_s16 = scalar_lea.vmem %s37_s28, 512  ;;  %p520_p4 = scmp.lt.s32.totalorder %s37_s28, %s37_s28 }
   0xd   :  { %p516_p3 = scmp.ne.s32.totalorder %s37_s28, %s515_s16  ;;  %p521_p5 = scmp.lt.s32.totalorder %s515_s16, %s515_s16 }
   0xf   :  { %p522_p6 = por %p521_p5, %p520_p4 }
  0x11   :  { %p523_p7 = pnand %p522_p6, %p516_p3 }
  0x13   :  { %526 = shalt.err (!%p523_p7)
}
  0x14   :  { %s693_s17 = smov 128   ;;  %s694_s18 = smov 8  }
  0x15   :  { %42 = dma.hbm_to_vmem [thread:$0]  %s900_s1, 512, %s37_s28, [#allocation6], %s693_s17, %s693_s17, %s694_s18  }
  0x16   :  { %s527_s23 = scalar_lea.hbm %s902_s3, 256 }
  0x17   :  { %p528_p8 = scmp.ne.s32.totalorder %s902_s3, %s527_s23  ;;  %p531_p9 = scmp.lt.u32.totalorder %s527_s23, %s902_s3 }
  0x19   :  { %p533_p10 = pnand %p531_p9, %p528_p8 }
  0x1b   :  { %536 = shalt.err (!%p533_p10)
}
  0x1c   :  { %s537_s29 = scalar_lea.vmem %s746_s30, 256  ;;  %p542_p12 = scmp.lt.s32.totalorder %s746_s30, %s746_s30 }
  0x1d   :  { %p538_p11 = scmp.ne.s32.totalorder %s746_s30, %s537_s29  ;;  %p543_p13 = scmp.lt.s32.totalorder %s537_s29, %s537_s29 }
  0x1f   :  { %p544_p0 = por %p543_p13, %p542_p12 }
  0x21   :  { %p545_p1 = pnand %p544_p0, %p538_p11 }
  0x23   :  { %548 = shalt.err (!%p545_p1)
}
  0x24   :  { %66 = dma.hbm_to_vmem [thread:$0]  %s902_s3, 256, %s746_s30, [#allocation9], %s693_s17, %s693_s17, %s694_s18  }
  0x25   :  { %s695_s9 = smov [#allocation2]   ;;  %s696_s11 = smov [#allocation7]  }
  0x26   :  { %s24_s10 = sshll.u32 %s695_s9, 4  ;;  %s48_s12 = sshll.u32 %s696_s11, 4  ;;  %s25_s10 = int_to_ptr.vmem [resolvable:$true] %s24_s10  ;;  %s783_s12 = int_to_ptr.vmem [resolvable:$true] %s48_s12 }
  0x27   :  { %s549_s15 = scalar_lea.hbm %s899_s0, 512 }
  0x28   :  { %p550_p2 = scmp.ne.s32.totalorder %s899_s0, %s549_s15  ;;  %p553_p3 = scmp.lt.u32.totalorder %s549_s15, %s899_s0 }
  0x2a   :  { %p555_p4 = pnand %p553_p3, %p550_p2 }
  0x2c   :  { %558 = shalt.err (!%p555_p4)
}
  0x2d   :  { %s559_s3 = scalar_lea.vmem %s25_s10, 512  ;;  %p564_p6 = scmp.lt.s32.totalorder %s25_s10, %s25_s10 }
  0x2e   :  { %p560_p5 = scmp.ne.s32.totalorder %s25_s10, %s559_s3  ;;  %p565_p7 = scmp.lt.s32.totalorder %s559_s3, %s559_s3 }
  0x30   :  { %p566_p8 = por %p565_p7, %p564_p6 }
  0x32   :  { %p567_p9 = pnand %p566_p8, %p560_p5 }
  0x34   :  { %570 = shalt.err (!%p567_p9)
}
  0x35   :  { %30 = dma.hbm_to_vmem [thread:$0]  %s899_s0, 512, %s25_s10, [#allocation3], %s693_s17, %s693_s17, %s694_s18  }
  0x36   :  { %s571_s25 = scalar_lea.hbm %s901_s2, 512 }
  0x37   :  { %p572_p10 = scmp.ne.s32.totalorder %s901_s2, %s571_s25  ;;  %p575_p11 = scmp.lt.u32.totalorder %s571_s25, %s901_s2 }
  0x39   :  { %p577_p12 = pnand %p575_p11, %p572_p10 }
  0x3b   :  { %580 = shalt.err (!%p577_p12)
}
  0x3c   :  { %s581_s28 = scalar_lea.vmem %s783_s12, 512  ;;  %p586_p0 = scmp.lt.s32.totalorder %s783_s12, %s783_s12 }
  0x3d   :  { %p582_p13 = scmp.ne.s32.totalorder %s783_s12, %s581_s28  ;;  %p587_p1 = scmp.lt.s32.totalorder %s581_s28, %s581_s28 }
  0x3f   :  { %p588_p2 = por %p587_p1, %p586_p0 }
  0x41   :  { %p589_p3 = pnand %p588_p2, %p582_p13 }
  0x43   :  { %592 = shalt.err (!%p589_p3)
}
  0x44   :  { %54 = dma.hbm_to_vmem [thread:$0]  %s901_s2, 512, %s783_s12, [#allocation6], %s693_s17, %s693_s17, %s694_s18  }
  0x45   :  { %s697_s10 = smov [#allocation10]   ;;  %s593_s15 = scalar_lea.hbm %s903_s4, 256 }
  0x46   :  { %s72_s11 = sshll.u32 %s697_s10, 4  ;;  %p594_p4 = scmp.ne.s32.totalorder %s903_s4, %s593_s15  ;;  %s73_s11 = int_to_ptr.vmem [resolvable:$true] %s72_s11 }
  0x47   :  { %p597_p5 = scmp.lt.u32.totalorder %s593_s15, %s903_s4 }
  0x49   :  { %p599_p6 = pnand %p597_p5, %p594_p4 }
  0x4b   :  { %602 = shalt.err (!%p599_p6)
}
  0x4c   :  { %s603_s3 = scalar_lea.vmem %s73_s11, 256  ;;  %p608_p8 = scmp.lt.s32.totalorder %s73_s11, %s73_s11 }
  0x4d   :  { %p604_p7 = scmp.ne.s32.totalorder %s73_s11, %s603_s3  ;;  %p609_p9 = scmp.lt.s32.totalorder %s603_s3, %s603_s3 }
  0x4f   :  { %p610_p10 = por %p609_p9, %p608_p8 }
  0x51   :  { %p611_p11 = pnand %p610_p10, %p604_p7 }
  0x53   :  { %614 = shalt.err (!%p611_p11)
}
  0x54   :  { %78 = dma.hbm_to_vmem [thread:$0]  %s903_s4, 256, %s73_s11, [#allocation9], %s693_s17, %s693_s17, %s694_s18  }
  0x55   :  { %681 = dma.done.wait [#allocation3], 512  }
  0x56   :  { %682 = vsyncadd [#allocation3], 4294966784 }
  0x57   :  { %683 = dma.done.wait [#allocation6], 1024  }
  0x58   :  { %684 = vsyncadd [#allocation6], 4294966272 }
  0x59   :  { %685 = dma.done.wait [#allocation9], 512  }
  0x5a   :  { %686 = vsyncadd [#allocation9], 4294966784  ;;  %v98_v0 = vld [vmem:[#allocation2] sm:$0xff]  ;;  %v99_v1 = vld [vmem:[#allocation2 + $0x8] sm:$0xff]  ;;  %vm102_vm0 = vcmask 261120   ;;  %s698_s24 = smov [#allocation11]  }
  0x5b   :  { %v100_v2 = vld [vmem:[#allocation2 + $0x10] sm:$0xff]  ;;  %v471_v3 = vpack.c.bf16 %v99_v1, %v98_v0  ;;  %v101_v4 = vld [vmem:[#allocation2 + $0x18] sm:$0xff]  ;;  %v188_v5 = vld [vmem:[#allocation5] sm:$0xff]  ;;  %s369_s25 = sshll.u32 %s698_s24, 4  ;;  %s699_s26 = smov [#allocation12]   ;;  %s370_s25 = int_to_ptr.vmem [resolvable:$true] %s369_s25 }
  0x5c   :  { %v189_v6 = vld [vmem:[#allocation5 + $0x8] sm:$0xff]  ;;  %v475_v7 = vpack.c.bf16 %v101_v4, %v100_v2  ;;  %v96_v9 = vld [vmem:[#allocation8] sm:$0xff]  ;;  %v190_v12 = vld [vmem:[#allocation5 + $0x10] sm:$0xff]  ;;  %s381_s27 = sshll.u32 %s699_s26, 4  ;;  %s615_s29 = scalar_lea.vmem %s370_s25, 256  ;;  %s847_s27 = int_to_ptr.vmem [resolvable:$true] %s381_s27 }
  0x5d   :  { %v479_v8 = vpack.c.bf16 %v189_v6, %v188_v5  ;;  %v277_v10 = vld [vmem:[#allocation7] sm:$0xff]  ;;  %472 = vmatprep.subr.bf16.mxu0 %v471_v3  ;;  %446 = vmatprep.mubr.msk.f32.mxu0 %vm102_vm0, %v96_v9  ;;  %v278_v11 = vld [vmem:[#allocation7 + $0x8] sm:$0xff]  ;;  %v191_v13 = vld [vmem:[#allocation5 + $0x18] sm:$0xff]  ;;  %p616_p12 = scmp.ne.s32.totalorder %s370_s25, %s615_s29  ;;  %p620_p13 = scmp.lt.s32.totalorder %s370_s25, %s370_s25 }
  0x5e   :  { %474 = vmatpush3.bf16.msra.mxu0 %v471_v3  ;;  %v483_v14 = vpack.c.bf16 %v191_v13, %v190_v12  ;;  %v186_v15 = vld [vmem:[#allocation10] sm:$0xff]  ;;  %v487_v16 = vpack.c.bf16 %v278_v11, %v277_v10  ;;  %v280_v18 = vld [vmem:[#allocation7 + $0x18] sm:$0xff]  ;;  %v97_v19 = vld [vmem:[#allocation8 + $0x8] sm:$0xff]  ;;  %p621_p0 = scmp.lt.s32.totalorder %s615_s29, %s615_s29 }
  0x5f   :  { %480 = vmatprep.subr.bf16.mxu1 %v479_v8  ;;  %476 = vmatprep.subr.bf16.mxu0 %v475_v7  ;;  %v279_v17 = vld [vmem:[#allocation7 + $0x10] sm:$0xff]  ;;  %v187_v21 = vld [vmem:[#allocation10 + $0x8] sm:$0xff]  ;;  %v275_v22 = vld [vmem:[%s904_s5] sm:$0xff] }
  0x60   :  { %482 = vmatpush3.bf16.msra.mxu1 %v479_v8  ;;  %457 = vmatprep.mubr.msk.f32.mxu1 %vm102_vm0, %v186_v15  ;;  %v491_v20 = vpack.c.bf16 %v280_v18, %v279_v17  ;;  %v276_v23 = vld [vmem:[%s904_s5 + $0x8] sm:$0xff]  ;;  %p622_p1 = por %p621_p0, %p620_p13 }
  0x61   :  { %484 = vmatprep.subr.bf16.mxu1 %v483_v14 }
  0x62   :  { %478 = vmatpush3.bf16.msra.mxu0 %v475_v7  ;;  %p623_p2 = pnand %p622_p1, %p616_p12 }
  0x63   :  { %488 = vmatprep.subr.bf16.mxu0 %v487_v16 }
  0x64   :  { %486 = vmatpush3.bf16.msra.mxu1 %v483_v14 }
  0x65   :  { %447 = vmatmul.mubr.msk.f32.vlgmr.msra.gmra.mrb[0].mxu0 %vm102_vm0, %v97_v19 }
  0x66   :  { %490 = vmatpush3.bf16.msra.mxu0 %v487_v16  ;;  %468 = vmatprep.mubr.msk.f32.mxu0 %vm102_vm0, %v275_v22 }
  0x67   :  { %458 = vmatmul.mubr.msk.f32.vlgmr.msra.gmra.mrb[0].mxu1 %vm102_vm0, %v187_v21  ;;  %492 = vmatprep.subr.bf16.mxu0 %v491_v20 }
  0x6a   :  { %494 = vmatpush3.bf16.msra.mxu0 %v491_v20 }
  0x6d   :  { %469 = vmatmul.mubr.msk.f32.vlgmr.msra.gmra.mrb[2].mxu0 %vm102_vm0, %v276_v23 }
 0x138   :  { %v448_v24 = vpop.f32.mrb[0].mxu0 }
 0x139   :  { %185 = vst [vmem:[#allocation11 + $0x8] sm:$0xff] %v448_v24  ;;  %v175_v25 = vpop.f32.mrb[1].mxu0 }
 0x13a   :  { %v459_v26 = vpop.f32.mrb[0].mxu1  ;;  %184 = vst [vmem:[#allocation11] sm:$0xff] %v175_v25 }
 0x13b   :  { %274 = vst [vmem:[#allocation12 + $0x8] sm:$0xff] %v459_v26  ;;  %v264_v27 = vpop.f32.mrb[1].mxu1 }
 0x13c   :  { %273 = vst [vmem:[#allocation12] sm:$0xff] %v264_v27 }
 0x13d   :  { %626 = shalt.err (!%p623_p2)
}
 0x13e   :  { %s627_s28 = scalar_lea.hbm %s905_s6, 256 }
 0x13f   :  { %p628_p3 = scmp.ne.s32.totalorder %s905_s6, %s627_s28  ;;  %p631_p4 = scmp.lt.u32.totalorder %s627_s28, %s905_s6 }
 0x141   :  { %p633_p5 = pnand %p631_p4, %p628_p3 }
 0x143   :  { %636 = shalt.err (!%p633_p5)
}
 0x144   :  { %375 = dma.vmem_to_hbm [thread:$0]  %s370_s25, 256, %s905_s6, [#allocation4], %s693_s17, %s693_s17, %s694_s18  }
 0x145   :  { %s637_s15 = scalar_lea.vmem %s847_s27, 256  ;;  %p642_p7 = scmp.lt.s32.totalorder %s847_s27, %s847_s27 }
 0x146   :  { %p638_p6 = scmp.ne.s32.totalorder %s847_s27, %s637_s15  ;;  %p643_p8 = scmp.lt.s32.totalorder %s637_s15, %s637_s15 }
 0x148   :  { %p644_p9 = por %p643_p8, %p642_p7 }
 0x14a   :  { %p645_p10 = pnand %p644_p9, %p638_p6 }
 0x14c   :  { %648 = shalt.err (!%p645_p10)
}
 0x14d   :  { %s649_s20 = scalar_lea.hbm %s906_s7, 256 }
 0x14e   :  { %p650_p11 = scmp.ne.s32.totalorder %s906_s7, %s649_s20  ;;  %p653_p12 = scmp.lt.u32.totalorder %s649_s20, %s906_s7 }
 0x150   :  { %p655_p13 = pnand %p653_p12, %p650_p11 }
 0x152   :  { %658 = shalt.err (!%p655_p13)
}
 0x153   :  { %387 = dma.vmem_to_hbm [thread:$0]  %s847_s27, 256, %s906_s7, [#allocation13], %s693_s17, %s693_s17, %s694_s18   ;;  %v470_v28 = vpop.f32.mrb[2].mxu0 }
 0x154   :  { %s700_s30 = smov [#allocation14]   ;;  %363 = vst [vmem:[#allocation14 + $0x8] sm:$0xff] %v470_v28  ;;  %v353_v29 = vpop.f32.mrb[3].mxu0 }
 0x155   :  { %s393_s22 = sshll.u32 %s700_s30, 4  ;;  %362 = vst [vmem:[#allocation14] sm:$0xff] %v353_v29  ;;  %s394_s22 = int_to_ptr.vmem [resolvable:$true] %s393_s22 }
 0x156   :  { %s659_s23 = scalar_lea.vmem %s394_s22, 256  ;;  %p664_p1 = scmp.lt.s32.totalorder %s394_s22, %s394_s22 }
 0x157   :  { %p660_p0 = scmp.ne.s32.totalorder %s394_s22, %s659_s23  ;;  %p665_p2 = scmp.lt.s32.totalorder %s659_s23, %s659_s23 }
 0x159   :  { %p666_p3 = por %p665_p2, %p664_p1 }
 0x15b   :  { %p667_p4 = pnand %p666_p3, %p660_p0 }
 0x15d   :  { %670 = shalt.err (!%p667_p4)
}
 0x15e   :  { %s671_s26 = scalar_lea.hbm %s907_s8, 256 }
 0x15f   :  { %p672_p5 = scmp.ne.s32.totalorder %s907_s8, %s671_s26  ;;  %p675_p6 = scmp.lt.u32.totalorder %s671_s26, %s907_s8 }
 0x161   :  { %p677_p7 = pnand %p675_p6, %p672_p5 }
 0x163   :  { %680 = shalt.err (!%p677_p7)
}
 0x164   :  { %399 = dma.vmem_to_hbm [thread:$0]  %s394_s22, 256, %s907_s8, [#allocation13], %s693_s17, %s693_s17, %s694_s18  }
 0x165   :  { %687 = dma.done.wait [#allocation4], 256  }
 0x166   :  { %688 = vsyncadd [#allocation4], 4294967040 }
 0x167   :  { %689 = dma.done.wait [#allocation13], 512  }
 0x168   :  { %690 = vsyncadd [#allocation13], 4294966784 }
 0x169   :  { %409 = vsyncpa [#allocation3], 1 }
 0x16a   :  { %410 = vsyncpa [#allocation6], 1 }
 0x16b   :  { %411 = vsyncpa [#allocation9], 1 }
 0x16c   :  { %412 = vsyncpa [#allocation4], 1 }
 0x16d   :  { %413 = vsyncpa [#allocation13], 1 }

</bundles_post_ra>
